<compile_context>
chip_gen: v6e
topology: v6e:2x2x1
jax: 0.10.0
libtpu: 0.0.40
codegen_flags: <defaults>
</compile_context>

<pallas_src>
import functools
import math

import jax
import jax.numpy as jnp
from jax import lax
from jax.experimental import pallas as pl
from jax.experimental.pallas import tpu as pltpu


def _layer_norm(x, gamma, beta, *, eps, d):
    # PyTorch Normalization: unbiased std, eps added to std (not variance).
    mean = jnp.mean(x, axis=-1, keepdims=True)
    centered = x - mean
    var = jnp.sum(centered * centered, axis=-1, keepdims=True) * (1.0 / (d - 1))
    std = jnp.sqrt(var)
    return gamma * (centered / (std + eps)) + beta


def _encoder_layer_kernel(x_ref, wqkv_ref, wo_ref, w1_ref, b1_ref, w2_ref,
                          b2_ref, g1_ref, be1_ref, g2_ref, be2_ref,
                          o_ref, ctx_ref, *,
                          num_heads, d_k, eps, compute_dtype, approx_recip):
    x = x_ref[...]                                   # (S, D) fp32
    d_model = x.shape[-1]
    cd = compute_dtype

    def mm(a, b):
        # MXU matmul on compute-dtype operands with fp32 accumulation.
        return jnp.dot(a.astype(cd), b.astype(cd),
                       preferred_element_type=jnp.float32)

    # ---- fused Q/K/V projection: one (S, D) @ (D, 3D) MXU call ----
    qkv = mm(x, wqkv_ref[...])                       # (S, 3D) fp32
    scale = 1.0 / math.sqrt(d_k)
    q = qkv[:, :d_model] * scale                     # scale hoisted onto Q
    k = qkv[:, d_model:2 * d_model]
    v = qkv[:, 2 * d_model:]

    # ---- per-head attention (static loop; num_heads is small) ----
    for h in range(num_heads):
        lo = h * d_k
        qh = q[:, lo:lo + d_k].astype(cd)
        kh = k[:, lo:lo + d_k].astype(cd)
        vh = v[:, lo:lo + d_k].astype(cd)

        # scores = Q_h @ K_h^T : contract last dims directly, no transpose.
        scores = lax.dot_general(
            qh, kh, dimension_numbers=(((1,), (1,)), ((), ())),
            preferred_element_type=jnp.float32)      # (S, S) fp32

        m = jnp.max(scores, axis=-1, keepdims=True)
        e = jnp.exp(scores - m)
        denom = jnp.sum(e, axis=-1, keepdims=True)
        inv = pl.reciprocal(denom, approx=approx_recip)
        attn = (e * inv).astype(cd)                  # (S, S)

        ctx_h = jnp.dot(attn, vh, preferred_element_type=jnp.float32)
        # Head concat: write into the column slice of the (S, D) scratch.
        ctx_ref[:, lo:lo + d_k] = ctx_h

    # ONE full-D output projection (S, D) @ (D, D).
    attn_out = mm(ctx_ref[...], wo_ref[...])         # (S, D) fp32

    # ---- residual + LayerNorm 1 ----
    y = _layer_norm(x + attn_out, g1_ref[...], be1_ref[...], eps=eps, d=d_model)

    # ---- feed-forward ----
    hdn = mm(y, w1_ref[...]) + b1_ref[...]           # (S, d_ff)
    hdn = jnp.maximum(hdn, 0.0)
    ff = mm(hdn, w2_ref[...]) + b2_ref[...]          # (S, D)

    # ---- residual + LayerNorm 2 ----
    out = _layer_norm(y + ff, g2_ref[...], be2_ref[...], eps=eps, d=d_model)
    o_ref[...] = out.astype(o_ref.dtype)


def encoder_layer(x, params, *, num_heads, compute_dtype=jnp.bfloat16):
    """Fused EncoderLayer forward. x: (B, S, D) float32 -> (B, S, D) float32."""
    B, S, D = x.shape
    d_ff = params["W_1"].shape[1]
    d_k = D // num_heads
    eps = 1e-6
    cd = compute_dtype
    f32 = jnp.float32

    # Fuse the three projection weights; pre-cast MXU weights to compute dtype.
    wqkv = jnp.concatenate(
        [params["W_Q"], params["W_K"], params["W_V"]], axis=1).astype(cd)
    wo = params["W_O"].astype(cd)
    w1 = params["W_1"].astype(cd)
    w2 = params["W_2"].astype(cd)
    # Small vectors stay fp32; reshape to (1, N) for clean 2-D VMEM layout.
    b1 = params["b_1"].reshape(1, d_ff).astype(f32)
    b2 = params["b_2"].reshape(1, D).astype(f32)
    g1 = params["gamma_1"].reshape(1, D).astype(f32)
    be1 = params["beta_1"].reshape(1, D).astype(f32)
    g2 = params["gamma_2"].reshape(1, D).astype(f32)
    be2 = params["beta_2"].reshape(1, D).astype(f32)

    kernel = functools.partial(
        _encoder_layer_kernel, num_heads=num_heads, d_k=d_k, eps=eps,
        compute_dtype=cd,
        approx_recip=(jnp.dtype(cd) == jnp.dtype(jnp.bfloat16)))

    def _full(a):
        return pl.BlockSpec(a.shape, lambda b: (0,) * a.ndim)

    x_spec = pl.BlockSpec((None, S, D), lambda b: (b, 0, 0))   # batch squeezed

    # Explicit VMEM budget: 2x (double-buffered) blocks + fp32 working set,
    # with headroom; floor at the 32 MiB default, cap for v7x's 64 MiB VMEM.
    w_item = jnp.dtype(cd).itemsize
    block_bytes = (2 * S * D * 4                                   # x + out
                   + w_item * (3 * D * D + D * D + D * d_ff + d_ff * D)
                   + 4 * (2 * d_ff + 5 * D))                       # vectors
    work_bytes = 4 * S * (3 * D + 6 * D + 2 * d_ff + num_heads * S)
    vmem_limit = int(min(max(2 * block_bytes + 2 * work_bytes,
                             32 * 1024 * 1024), 56 * 1024 * 1024))

    return pl.pallas_call(
        kernel,
        out_shape=jax.ShapeDtypeStruct((B, S, D), jnp.float32),
        grid_spec=pltpu.PrefetchScalarGridSpec(
            num_scalar_prefetch=0,
            grid=(B,),
            in_specs=[x_spec, _full(wqkv), _full(wo), _full(w1), _full(b1),
                      _full(w2), _full(b2), _full(g1), _full(be1), _full(g2),
                      _full(be2)],
            out_specs=pl.BlockSpec((None, S, D), lambda b: (b, 0, 0)),
            scratch_shapes=[pltpu.VMEM((S, D), jnp.float32)],
        ),
        compiler_params=pltpu.CompilerParams(
            dimension_semantics=("parallel",),
            vmem_limit_bytes=vmem_limit),
    )(x, wqkv, wo, w1, b1, w2, b2, g1, be1, g2, be2)


def _reference(x, params, num_heads):
    """Pure-JAX mirror of the PyTorch EncoderLayer.forward."""
    B, S, D = x.shape
    d_k = D // num_heads
    eps = 1e-6

    def split(t):
        return jnp.transpose(t.reshape(B, S, num_heads, d_k), (0, 2, 1, 3))

    Q = split(x @ params["W_Q"])
    K = split(x @ params["W_K"])
    V = split(x @ params["W_V"])
    scores = jnp.einsum("bhqd,bhkd->bhqk", Q, K) / jnp.sqrt(jnp.float32(d_k))
    attn = jax.nn.softmax(scores, axis=-1)
    ctx = jnp.einsum("bhqk,bhkd->bhqd", attn, V)
    ctx = jnp.transpose(ctx, (0, 2, 1, 3)).reshape(B, S, D)
    attn_out = ctx @ params["W_O"]

    def layer_norm(t, gamma, beta):
        mean = jnp.mean(t, axis=-1, keepdims=True)
        std = jnp.std(t, axis=-1, keepdims=True, ddof=1)   # torch unbiased std
        return gamma * (t - mean) / (std + eps) + beta

    y = layer_norm(x + attn_out, params["gamma_1"], params["beta_1"])
    hdn = jax.nn.relu(y @ params["W_1"] + params["b_1"])
    ff = hdn @ params["W_2"] + params["b_2"]
    return layer_norm(y + ff, params["gamma_2"], params["beta_2"])


if __name__ == "__main__":
    batch, seq, d_model, num_heads, d_ff = 2, 8, 32, 4, 64

    key = jax.random.PRNGKey(0)
    keys = jax.random.split(key, 10)

    def xavier(k, n_in, n_out):
        std = (2.0 / (n_in + n_out)) ** 0.5
        return std * jax.random.normal(k, (n_in, n_out), dtype=jnp.float32)

    x = jax.random.normal(keys[0], (batch, seq, d_model), dtype=jnp.float32)

    params = {
        "W_Q": xavier(keys[1], d_model, d_model),
        "W_K": xavier(keys[2], d_model, d_model),
        "W_V": xavier(keys[3], d_model, d_model),
        "W_O": xavier(keys[4], d_model, d_model),
        "W_1": xavier(keys[5], d_model, d_ff),
        "b_1": jnp.zeros((d_ff,), jnp.float32),
        "W_2": xavier(keys[6], d_ff, d_model),
        "b_2": jnp.zeros((d_model,), jnp.float32),
        # gamma/beta are learnable; use non-trivial values to exercise them.
        "gamma_1": 1.0 + 0.1 * jax.random.normal(keys[7], (d_model,), jnp.float32),
        "beta_1": 0.1 * jax.random.normal(keys[8], (d_model,), jnp.float32),
        "gamma_2": 1.0 + 0.1 * jax.random.normal(keys[9], (d_model,), jnp.float32),
        "beta_2": jnp.zeros((d_model,), jnp.float32),
    }

    ref = _reference(x, params, num_heads)

    # fp32 compute path: tight algorithmic check.
    out_f32 = jax.block_until_ready(
        encoder_layer(x, params, num_heads=num_heads, compute_dtype=jnp.float32))
    assert out_f32.shape == (batch, seq, d_model)
    assert jnp.allclose(out_f32, ref, atol=1e-3, rtol=1e-3), \
        float(jnp.max(jnp.abs(out_f32 - ref)))

    # bf16 MXU path (default, the fast path): looser tolerance for bf16 operands.
    out_bf16 = jax.block_until_ready(
        encoder_layer(x, params, num_heads=num_heads, compute_dtype=jnp.bfloat16))
    assert out_bf16.shape == (batch, seq, d_model)
    assert jnp.allclose(out_bf16, ref, atol=1e-1, rtol=1e-1), \
        float(jnp.max(jnp.abs(out_bf16 - ref)))

    print("KERNEL_OK")
</pallas_src>

<mosaic_0001>
module attributes {stable_mosaic.version = 11 : i64} {
  func.func @_encoder_layer_kernel(%arg0: i32, %arg1: memref<1x8x32xf32, #tpu.memory_space<vmem>>, %arg2: memref<32x96xf32, #tpu.memory_space<vmem>>, %arg3: memref<32x32xf32, #tpu.memory_space<vmem>>, %arg4: memref<32x64xf32, #tpu.memory_space<vmem>>, %arg5: memref<1x64xf32, #tpu.memory_space<vmem>>, %arg6: memref<64x32xf32, #tpu.memory_space<vmem>>, %arg7: memref<1x32xf32, #tpu.memory_space<vmem>>, %arg8: memref<1x32xf32, #tpu.memory_space<vmem>>, %arg9: memref<1x32xf32, #tpu.memory_space<vmem>>, %arg10: memref<1x32xf32, #tpu.memory_space<vmem>>, %arg11: memref<1x32xf32, #tpu.memory_space<vmem>>, %arg12: memref<1x8x32xf32, #tpu.memory_space<vmem>>, %arg13: memref<8x32xf32, #tpu.memory_space<vmem>>) attributes {dimension_semantics = [#tpu.dimension_semantics<parallel>], iteration_bounds = array<i64: 2>, scalar_prefetch = 0 : i64, scratch_operands = 1 : i64, tpu.core_type = #tpu.core_type<tc>, window_params = [{transform_indices = @transform_0, window_bounds = array<i64: 1, 8, 32>}, {pipeline_mode = #tpu.pipeline_mode<synchronous>, transform_indices = @transform_1, window_bounds = array<i64: 32, 96>}, {pipeline_mode = #tpu.pipeline_mode<synchronous>, transform_indices = @transform_2, window_bounds = array<i64: 32, 32>}, {pipeline_mode = #tpu.pipeline_mode<synchronous>, transform_indices = @transform_3, window_bounds = array<i64: 32, 64>}, {pipeline_mode = #tpu.pipeline_mode<synchronous>, transform_indices = @transform_4, window_bounds = array<i64: 1, 64>}, {pipeline_mode = #tpu.pipeline_mode<synchronous>, transform_indices = @transform_5, window_bounds = array<i64: 64, 32>}, {pipeline_mode = #tpu.pipeline_mode<synchronous>, transform_indices = @transform_6, window_bounds = array<i64: 1, 32>}, {pipeline_mode = #tpu.pipeline_mode<synchronous>, transform_indices = @transform_7, window_bounds = array<i64: 1, 32>}, {pipeline_mode = #tpu.pipeline_mode<synchronous>, transform_indices = @transform_8, window_bounds = array<i64: 1, 32>}, {pipeline_mode = #tpu.pipeline_mode<synchronous>, transform_indices = @transform_9, window_bounds = array<i64: 1, 32>}, {pipeline_mode = #tpu.pipeline_mode<synchronous>, transform_indices = @transform_10, window_bounds = array<i64: 1, 32>}, {transform_indices = @transform_11, window_bounds = array<i64: 1, 8, 32>}]} {
    %c0 = arith.constant 0 : index
    %c0_0 = arith.constant 0 : index
    %c0_1 = arith.constant 0 : index
    %0 = vector.load %arg1[%c0, %c0_0, %c0_1] : memref<1x8x32xf32, #tpu.memory_space<vmem>>, vector<1x8x32xf32>
    %1 = vector.shape_cast %0 : vector<1x8x32xf32> to vector<8x32xf32>
    %c0_2 = arith.constant 0 : index
    %c0_3 = arith.constant 0 : index
    %2 = vector.load %arg2[%c0_2, %c0_3] : memref<32x96xf32, #tpu.memory_space<vmem>>, vector<32x96xf32>
    %cst = arith.constant dense<0.000000e+00> : vector<8x96xf32>
    %3 = tpu.matmul %1, %2, %cst {dimension_numbers = #tpu.dot_dimension_numbers<[1], [0], [0], [1], [0, 0, 1, 1], [], []>} : vector<8x32xf32>, vector<32x96xf32>, vector<8x96xf32> -> vector<8x96xf32>
    %4 = vector.extract_strided_slice %3 {offsets = [0, 0], sizes = [8, 32], strides = [1, 1]} : vector<8x96xf32> to vector<8x32xf32>
    %cst_4 = arith.constant 0.353553385 : f32
    %5 = vector.broadcast %cst_4 : f32 to vector<8x32xf32>
    %6 = arith.mulf %4, %5 : vector<8x32xf32>
    %7 = vector.extract_strided_slice %3 {offsets = [0, 32], sizes = [8, 32], strides = [1, 1]} : vector<8x96xf32> to vector<8x32xf32>
    %8 = vector.extract_strided_slice %3 {offsets = [0, 64], sizes = [8, 32], strides = [1, 1]} : vector<8x96xf32> to vector<8x32xf32>
    %9 = vector.extract_strided_slice %6 {offsets = [0, 0], sizes = [8, 8], strides = [1, 1]} : vector<8x32xf32> to vector<8x8xf32>
    %10 = vector.extract_strided_slice %7 {offsets = [0, 0], sizes = [8, 8], strides = [1, 1]} : vector<8x32xf32> to vector<8x8xf32>
    %11 = vector.extract_strided_slice %8 {offsets = [0, 0], sizes = [8, 8], strides = [1, 1]} : vector<8x32xf32> to vector<8x8xf32>
    %cst_5 = arith.constant dense<0.000000e+00> : vector<8x8xf32>
    %12 = tpu.matmul %9, %10, %cst_5 {dimension_numbers = #tpu.dot_dimension_numbers<[1], [1], [0], [0], [0, 0, 1, 0], [], []>} : vector<8x8xf32>, vector<8x8xf32>, vector<8x8xf32> -> vector<8x8xf32>
    %cst_6 = arith.constant dense<0xFF800000> : vector<8xf32>
    %13 = vector.multi_reduction <maximumf>, %12, %cst_6 [1] : vector<8x8xf32> to vector<8xf32>
    %14 = vector.shape_cast %13 : vector<8xf32> to vector<8x1xf32>
    %15 = vector.broadcast %14 : vector<8x1xf32> to vector<8x8xf32>
    %16 = arith.subf %12, %15 : vector<8x8xf32>
    %17 = math.exp %16 : vector<8x8xf32>
    %cst_7 = arith.constant dense<0.000000e+00> : vector<8xf32>
    %18 = vector.multi_reduction <add>, %17, %cst_7 [1] : vector<8x8xf32> to vector<8xf32>
    %19 = vector.shape_cast %18 : vector<8xf32> to vector<8x1xf32>
    %20 = tpu.reciprocal %19 : vector<8x1xf32> -> vector<8x1xf32>
    %21 = vector.broadcast %20 : vector<8x1xf32> to vector<8x8xf32>
    %22 = arith.mulf %17, %21 : vector<8x8xf32>
    %cst_8 = arith.constant dense<0.000000e+00> : vector<8x8xf32>
    %23 = tpu.matmul %22, %11, %cst_8 {dimension_numbers = #tpu.dot_dimension_numbers<[1], [0], [0], [1], [0, 0, 1, 1], [], []>} : vector<8x8xf32>, vector<8x8xf32>, vector<8x8xf32> -> vector<8x8xf32>
    %c0_9 = arith.constant 0 : index
    %c0_10 = arith.constant 0 : index
    %24 = vector.load %arg13[%c0_9, %c0_10] : memref<8x32xf32, #tpu.memory_space<vmem>>, vector<8x8xf32>
    tpu.vector_store %arg13[%c0_9, %c0_10], %23 {strides = array<i32>} : memref<8x32xf32, #tpu.memory_space<vmem>>, vector<8x8xf32>,
    %25 = vector.extract_strided_slice %6 {offsets = [0, 8], sizes = [8, 8], strides = [1, 1]} : vector<8x32xf32> to vector<8x8xf32>
    %26 = vector.extract_strided_slice %7 {offsets = [0, 8], sizes = [8, 8], strides = [1, 1]} : vector<8x32xf32> to vector<8x8xf32>
    %27 = vector.extract_strided_slice %8 {offsets = [0, 8], sizes = [8, 8], strides = [1, 1]} : vector<8x32xf32> to vector<8x8xf32>
    %cst_11 = arith.constant dense<0.000000e+00> : vector<8x8xf32>
    %28 = tpu.matmul %25, %26, %cst_11 {dimension_numbers = #tpu.dot_dimension_numbers<[1], [1], [0], [0], [0, 0, 1, 0], [], []>} : vector<8x8xf32>, vector<8x8xf32>, vector<8x8xf32> -> vector<8x8xf32>
    %cst_12 = arith.constant dense<0xFF800000> : vector<8xf32>
    %29 = vector.multi_reduction <maximumf>, %28, %cst_12 [1] : vector<8x8xf32> to vector<8xf32>
    %30 = vector.shape_cast %29 : vector<8xf32> to vector<8x1xf32>
    %31 = vector.broadcast %30 : vector<8x1xf32> to vector<8x8xf32>
    %32 = arith.subf %28, %31 : vector<8x8xf32>
    %33 = math.exp %32 : vector<8x8xf32>
    %cst_13 = arith.constant dense<0.000000e+00> : vector<8xf32>
    %34 = vector.multi_reduction <add>, %33, %cst_13 [1] : vector<8x8xf32> to vector<8xf32>
    %35 = vector.shape_cast %34 : vector<8xf32> to vector<8x1xf32>
    %36 = tpu.reciprocal %35 : vector<8x1xf32> -> vector<8x1xf32>
    %37 = vector.broadcast %36 : vector<8x1xf32> to vector<8x8xf32>
    %38 = arith.mulf %33, %37 : vector<8x8xf32>
    %cst_14 = arith.constant dense<0.000000e+00> : vector<8x8xf32>
    %39 = tpu.matmul %38, %27, %cst_14 {dimension_numbers = #tpu.dot_dimension_numbers<[1], [0], [0], [1], [0, 0, 1, 1], [], []>} : vector<8x8xf32>, vector<8x8xf32>, vector<8x8xf32> -> vector<8x8xf32>
    %c0_15 = arith.constant 0 : index
    %c8 = arith.constant 8 : index
    %40 = vector.load %arg13[%c0_15, %c8] : memref<8x32xf32, #tpu.memory_space<vmem>>, vector<8x8xf32>
    tpu.vector_store %arg13[%c0_15, %c8], %39 {strides = array<i32>} : memref<8x32xf32, #tpu.memory_space<vmem>>, vector<8x8xf32>,
    %41 = vector.extract_strided_slice %6 {offsets = [0, 16], sizes = [8, 8], strides = [1, 1]} : vector<8x32xf32> to vector<8x8xf32>
    %42 = vector.extract_strided_slice %7 {offsets = [0, 16], sizes = [8, 8], strides = [1, 1]} : vector<8x32xf32> to vector<8x8xf32>
    %43 = vector.extract_strided_slice %8 {offsets = [0, 16], sizes = [8, 8], strides = [1, 1]} : vector<8x32xf32> to vector<8x8xf32>
    %cst_16 = arith.constant dense<0.000000e+00> : vector<8x8xf32>
    %44 = tpu.matmul %41, %42, %cst_16 {dimension_numbers = #tpu.dot_dimension_numbers<[1], [1], [0], [0], [0, 0, 1, 0], [], []>} : vector<8x8xf32>, vector<8x8xf32>, vector<8x8xf32> -> vector<8x8xf32>
    %cst_17 = arith.constant dense<0xFF800000> : vector<8xf32>
    %45 = vector.multi_reduction <maximumf>, %44, %cst_17 [1] : vector<8x8xf32> to vector<8xf32>
    %46 = vector.shape_cast %45 : vector<8xf32> to vector<8x1xf32>
    %47 = vector.broadcast %46 : vector<8x1xf32> to vector<8x8xf32>
    %48 = arith.subf %44, %47 : vector<8x8xf32>
    %49 = math.exp %48 : vector<8x8xf32>
    %cst_18 = arith.constant dense<0.000000e+00> : vector<8xf32>
    %50 = vector.multi_reduction <add>, %49, %cst_18 [1] : vector<8x8xf32> to vector<8xf32>
    %51 = vector.shape_cast %50 : vector<8xf32> to vector<8x1xf32>
    %52 = tpu.reciprocal %51 : vector<8x1xf32> -> vector<8x1xf32>
    %53 = vector.broadcast %52 : vector<8x1xf32> to vector<8x8xf32>
    %54 = arith.mulf %49, %53 : vector<8x8xf32>
    %cst_19 = arith.constant dense<0.000000e+00> : vector<8x8xf32>
    %55 = tpu.matmul %54, %43, %cst_19 {dimension_numbers = #tpu.dot_dimension_numbers<[1], [0], [0], [1], [0, 0, 1, 1], [], []>} : vector<8x8xf32>, vector<8x8xf32>, vector<8x8xf32> -> vector<8x8xf32>
    %c0_20 = arith.constant 0 : index
    %c16 = arith.constant 16 : index
    %56 = vector.load %arg13[%c0_20, %c16] : memref<8x32xf32, #tpu.memory_space<vmem>>, vector<8x8xf32>
    tpu.vector_store %arg13[%c0_20, %c16], %55 {strides = array<i32>} : memref<8x32xf32, #tpu.memory_space<vmem>>, vector<8x8xf32>,
    %57 = vector.extract_strided_slice %6 {offsets = [0, 24], sizes = [8, 8], strides = [1, 1]} : vector<8x32xf32> to vector<8x8xf32>
    %58 = vector.extract_strided_slice %7 {offsets = [0, 24], sizes = [8, 8], strides = [1, 1]} : vector<8x32xf32> to vector<8x8xf32>
    %59 = vector.extract_strided_slice %8 {offsets = [0, 24], sizes = [8, 8], strides = [1, 1]} : vector<8x32xf32> to vector<8x8xf32>
    %cst_21 = arith.constant dense<0.000000e+00> : vector<8x8xf32>
    %60 = tpu.matmul %57, %58, %cst_21 {dimension_numbers = #tpu.dot_dimension_numbers<[1], [1], [0], [0], [0, 0, 1, 0], [], []>} : vector<8x8xf32>, vector<8x8xf32>, vector<8x8xf32> -> vector<8x8xf32>
    %cst_22 = arith.constant dense<0xFF800000> : vector<8xf32>
    %61 = vector.multi_reduction <maximumf>, %60, %cst_22 [1] : vector<8x8xf32> to vector<8xf32>
    %62 = vector.shape_cast %61 : vector<8xf32> to vector<8x1xf32>
    %63 = vector.broadcast %62 : vector<8x1xf32> to vector<8x8xf32>
    %64 = arith.subf %60, %63 : vector<8x8xf32>
    %65 = math.exp %64 : vector<8x8xf32>
    %cst_23 = arith.constant dense<0.000000e+00> : vector<8xf32>
    %66 = vector.multi_reduction <add>, %65, %cst_23 [1] : vector<8x8xf32> to vector<8xf32>
    %67 = vector.shape_cast %66 : vector<8xf32> to vector<8x1xf32>
    %68 = tpu.reciprocal %67 : vector<8x1xf32> -> vector<8x1xf32>
    %69 = vector.broadcast %68 : vector<8x1xf32> to vector<8x8xf32>
    %70 = arith.mulf %65, %69 : vector<8x8xf32>
    %cst_24 = arith.constant dense<0.000000e+00> : vector<8x8xf32>
    %71 = tpu.matmul %70, %59, %cst_24 {dimension_numbers = #tpu.dot_dimension_numbers<[1], [0], [0], [1], [0, 0, 1, 1], [], []>} : vector<8x8xf32>, vector<8x8xf32>, vector<8x8xf32> -> vector<8x8xf32>
    %c0_25 = arith.constant 0 : index
    %c24 = arith.constant 24 : index
    %72 = vector.load %arg13[%c0_25, %c24] : memref<8x32xf32, #tpu.memory_space<vmem>>, vector<8x8xf32>
    tpu.vector_store %arg13[%c0_25, %c24], %71 {strides = array<i32>} : memref<8x32xf32, #tpu.memory_space<vmem>>, vector<8x8xf32>,
    %c0_26 = arith.constant 0 : index
    %c0_27 = arith.constant 0 : index
    %73 = vector.load %arg13[%c0_26, %c0_27] : memref<8x32xf32, #tpu.memory_space<vmem>>, vector<8x32xf32>
    %c0_28 = arith.constant 0 : index
    %c0_29 = arith.constant 0 : index
    %74 = vector.load %arg3[%c0_28, %c0_29] : memref<32x32xf32, #tpu.memory_space<vmem>>, vector<32x32xf32>
    %cst_30 = arith.constant dense<0.000000e+00> : vector<8x32xf32>
    %75 = tpu.matmul %73, %74, %cst_30 {dimension_numbers = #tpu.dot_dimension_numbers<[1], [0], [0], [1], [0, 0, 1, 1], [], []>} : vector<8x32xf32>, vector<32x32xf32>, vector<8x32xf32> -> vector<8x32xf32>
    %76 = arith.addf %1, %75 : vector<8x32xf32>
    %c0_31 = arith.constant 0 : index
    %c0_32 = arith.constant 0 : index
    %77 = vector.load %arg8[%c0_31, %c0_32] : memref<1x32xf32, #tpu.memory_space<vmem>>, vector<1x32xf32>
    %c0_33 = arith.constant 0 : index
    %c0_34 = arith.constant 0 : index
    %78 = vector.load %arg9[%c0_33, %c0_34] : memref<1x32xf32, #tpu.memory_space<vmem>>, vector<1x32xf32>
    %cst_35 = arith.constant dense<0.000000e+00> : vector<8xf32>
    %79 = vector.multi_reduction <add>, %76, %cst_35 [1] : vector<8x32xf32> to vector<8xf32>
    %80 = vector.shape_cast %79 : vector<8xf32> to vector<8x1xf32>
    %cst_36 = arith.constant 3.200000e+01 : f32
    %81 = vector.broadcast %cst_36 : f32 to vector<8x1xf32>
    %82 = arith.divf %80, %81 : vector<8x1xf32>
    %83 = vector.broadcast %82 : vector<8x1xf32> to vector<8x32xf32>
    %84 = arith.subf %76, %83 : vector<8x32xf32>
    %85 = arith.mulf %84, %84 : vector<8x32xf32>
    %cst_37 = arith.constant dense<0.000000e+00> : vector<8xf32>
    %86 = vector.multi_reduction <add>, %85, %cst_37 [1] : vector<8x32xf32> to vector<8xf32>
    %87 = vector.shape_cast %86 : vector<8xf32> to vector<8x1xf32>
    %cst_38 = arith.constant 0.0322580636 : f32
    %88 = vector.broadcast %cst_38 : f32 to vector<8x1xf32>
    %89 = arith.mulf %87, %88 : vector<8x1xf32>
    %90 = math.sqrt %89 : vector<8x1xf32>
    %cst_39 = arith.constant 9.99999997E-7 : f32
    %91 = vector.broadcast %cst_39 : f32 to vector<8x1xf32>
    %92 = arith.addf %90, %91 : vector<8x1xf32>
    %93 = vector.broadcast %92 : vector<8x1xf32> to vector<8x32xf32>
    %94 = arith.divf %84, %93 : vector<8x32xf32>
    %95 = vector.broadcast %77 : vector<1x32xf32> to vector<8x32xf32>
    %96 = arith.mulf %95, %94 : vector<8x32xf32>
    %97 = vector.broadcast %78 : vector<1x32xf32> to vector<8x32xf32>
    %98 = arith.addf %96, %97 : vector<8x32xf32>
    %c0_40 = arith.constant 0 : index
    %c0_41 = arith.constant 0 : index
    %99 = vector.load %arg4[%c0_40, %c0_41] : memref<32x64xf32, #tpu.memory_space<vmem>>, vector<32x64xf32>
    %cst_42 = arith.constant dense<0.000000e+00> : vector<8x64xf32>
    %100 = tpu.matmul %98, %99, %cst_42 {dimension_numbers = #tpu.dot_dimension_numbers<[1], [0], [0], [1], [0, 0, 1, 1], [], []>} : vector<8x32xf32>, vector<32x64xf32>, vector<8x64xf32> -> vector<8x64xf32>
    %c0_43 = arith.constant 0 : index
    %c0_44 = arith.constant 0 : index
    %101 = vector.load %arg5[%c0_43, %c0_44] : memref<1x64xf32, #tpu.memory_space<vmem>>, vector<1x64xf32>
    %102 = vector.broadcast %101 : vector<1x64xf32> to vector<8x64xf32>
    %103 = arith.addf %100, %102 : vector<8x64xf32>
    %cst_45 = arith.constant 0.000000e+00 : f32
    %104 = vector.broadcast %cst_45 : f32 to vector<8x64xf32>
    %105 = arith.maximumf %103, %104 : vector<8x64xf32>
    %c0_46 = arith.constant 0 : index
    %c0_47 = arith.constant 0 : index
    %106 = vector.load %arg6[%c0_46, %c0_47] : memref<64x32xf32, #tpu.memory_space<vmem>>, vector<64x32xf32>
    %cst_48 = arith.constant dense<0.000000e+00> : vector<8x32xf32>
    %107 = tpu.matmul %105, %106, %cst_48 {dimension_numbers = #tpu.dot_dimension_numbers<[1], [0], [0], [1], [0, 0, 1, 1], [], []>} : vector<8x64xf32>, vector<64x32xf32>, vector<8x32xf32> -> vector<8x32xf32>
    %c0_49 = arith.constant 0 : index
    %c0_50 = arith.constant 0 : index
    %108 = vector.load %arg7[%c0_49, %c0_50] : memref<1x32xf32, #tpu.memory_space<vmem>>, vector<1x32xf32>
    %109 = vector.broadcast %108 : vector<1x32xf32> to vector<8x32xf32>
    %110 = arith.addf %107, %109 : vector<8x32xf32>
    %111 = arith.addf %98, %110 : vector<8x32xf32>
    %c0_51 = arith.constant 0 : index
    %c0_52 = arith.constant 0 : index
    %112 = vector.load %arg10[%c0_51, %c0_52] : memref<1x32xf32, #tpu.memory_space<vmem>>, vector<1x32xf32>
    %c0_53 = arith.constant 0 : index
    %c0_54 = arith.constant 0 : index
    %113 = vector.load %arg11[%c0_53, %c0_54] : memref<1x32xf32, #tpu.memory_space<vmem>>, vector<1x32xf32>
    %cst_55 = arith.constant dense<0.000000e+00> : vector<8xf32>
    %114 = vector.multi_reduction <add>, %111, %cst_55 [1] : vector<8x32xf32> to vector<8xf32>
    %115 = vector.shape_cast %114 : vector<8xf32> to vector<8x1xf32>
    %cst_56 = arith.constant 3.200000e+01 : f32
    %116 = vector.broadcast %cst_56 : f32 to vector<8x1xf32>
    %117 = arith.divf %115, %116 : vector<8x1xf32>
    %118 = vector.broadcast %117 : vector<8x1xf32> to vector<8x32xf32>
    %119 = arith.subf %111, %118 : vector<8x32xf32>
    %120 = arith.mulf %119, %119 : vector<8x32xf32>
    %cst_57 = arith.constant dense<0.000000e+00> : vector<8xf32>
    %121 = vector.multi_reduction <add>, %120, %cst_57 [1] : vector<8x32xf32> to vector<8xf32>
    %122 = vector.shape_cast %121 : vector<8xf32> to vector<8x1xf32>
    %cst_58 = arith.constant 0.0322580636 : f32
    %123 = vector.broadcast %cst_58 : f32 to vector<8x1xf32>
    %124 = arith.mulf %122, %123 : vector<8x1xf32>
    %125 = math.sqrt %124 : vector<8x1xf32>
    %cst_59 = arith.constant 9.99999997E-7 : f32
    %126 = vector.broadcast %cst_59 : f32 to vector<8x1xf32>
    %127 = arith.addf %125, %126 : vector<8x1xf32>
    %128 = vector.broadcast %127 : vector<8x1xf32> to vector<8x32xf32>
    %129 = arith.divf %119, %128 : vector<8x32xf32>
    %130 = vector.broadcast %112 : vector<1x32xf32> to vector<8x32xf32>
    %131 = arith.mulf %130, %129 : vector<8x32xf32>
    %132 = vector.broadcast %113 : vector<1x32xf32> to vector<8x32xf32>
    %133 = arith.addf %131, %132 : vector<8x32xf32>
    %c0_60 = arith.constant 0 : index
    %c0_61 = arith.constant 0 : index
    %c0_62 = arith.constant 0 : index
    %134 = vector.load %arg12[%c0_60, %c0_61, %c0_62] : memref<1x8x32xf32, #tpu.memory_space<vmem>>, vector<1x8x32xf32>
    %135 = vector.shape_cast %134 : vector<1x8x32xf32> to vector<8x32xf32>
    %136 = vector.shape_cast %133 : vector<8x32xf32> to vector<1x8x32xf32>
    tpu.vector_store %arg12[%c0_60, %c0_61, %c0_62], %136 {strides = array<i32>} : memref<1x8x32xf32, #tpu.memory_space<vmem>>, vector<1x8x32xf32>,
    return
  }
  func.func @transform_0(%arg0: i32) -> (i32, i32, i32) {
    %c0_i32 = arith.constant 0 : i32
    %c0_i32_0 = arith.constant 0 : i32
    %c0_i32_1 = arith.constant 0 : i32
    return %arg0, %c0_i32, %c0_i32_0 : i32, i32, i32
  }
  func.func @transform_1(%arg0: i32) -> (i32, i32) {
    %c0_i32 = arith.constant 0 : i32
    %c0_i32_0 = arith.constant 0 : i32
    %c0_i32_1 = arith.constant 0 : i32
    return %c0_i32, %c0_i32_0 : i32, i32
  }
  func.func @transform_2(%arg0: i32) -> (i32, i32) {
    %c0_i32 = arith.constant 0 : i32
    %c0_i32_0 = arith.constant 0 : i32
    %c0_i32_1 = arith.constant 0 : i32
    return %c0_i32, %c0_i32_0 : i32, i32
  }
  func.func @transform_3(%arg0: i32) -> (i32, i32) {
    %c0_i32 = arith.constant 0 : i32
    %c0_i32_0 = arith.constant 0 : i32
    %c0_i32_1 = arith.constant 0 : i32
    return %c0_i32, %c0_i32_0 : i32, i32
  }
  func.func @transform_4(%arg0: i32) -> (i32, i32) {
    %c0_i32 = arith.constant 0 : i32
    %c0_i32_0 = arith.constant 0 : i32
    %c0_i32_1 = arith.constant 0 : i32
    return %c0_i32, %c0_i32_0 : i32, i32
  }
  func.func @transform_5(%arg0: i32) -> (i32, i32) {
    %c0_i32 = arith.constant 0 : i32
    %c0_i32_0 = arith.constant 0 : i32
    %c0_i32_1 = arith.constant 0 : i32
    return %c0_i32, %c0_i32_0 : i32, i32
  }
  func.func @transform_6(%arg0: i32) -> (i32, i32) {
    %c0_i32 = arith.constant 0 : i32
    %c0_i32_0 = arith.constant 0 : i32
    %c0_i32_1 = arith.constant 0 : i32
    return %c0_i32, %c0_i32_0 : i32, i32
  }
  func.func @transform_7(%arg0: i32) -> (i32, i32) {
    %c0_i32 = arith.constant 0 : i32
    %c0_i32_0 = arith.constant 0 : i32
    %c0_i32_1 = arith.constant 0 : i32
    return %c0_i32, %c0_i32_0 : i32, i32
  }
  func.func @transform_8(%arg0: i32) -> (i32, i32) {
    %c0_i32 = arith.constant 0 : i32
    %c0_i32_0 = arith.constant 0 : i32
    %c0_i32_1 = arith.constant 0 : i32
    return %c0_i32, %c0_i32_0 : i32, i32
  }
  func.func @transform_9(%arg0: i32) -> (i32, i32) {
    %c0_i32 = arith.constant 0 : i32
    %c0_i32_0 = arith.constant 0 : i32
    %c0_i32_1 = arith.constant 0 : i32
    return %c0_i32, %c0_i32_0 : i32, i32
  }
  func.func @transform_10(%arg0: i32) -> (i32, i32) {
    %c0_i32 = arith.constant 0 : i32
    %c0_i32_0 = arith.constant 0 : i32
    %c0_i32_1 = arith.constant 0 : i32
    return %c0_i32, %c0_i32_0 : i32, i32
  }
  func.func @transform_11(%arg0: i32) -> (i32, i32, i32) {
    %c0_i32 = arith.constant 0 : i32
    %c0_i32_0 = arith.constant 0 : i32
    %c0_i32_1 = arith.constant 0 : i32
    return %arg0, %c0_i32, %c0_i32_0 : i32, i32, i32
  }
}

</mosaic_0001>

<bundles_post_ra>
// kernel: tpu_custom_call.1
= control target key start
LH: loop header
LB: loop body
LE: loop exit
PB: predicated region body
PF: predicated region fallthrough
CT: control target
= control target key end

     0   :  { %16 = vsyncpa [#allocation4], 0  ;;  %s2317_s0 = inlined_call_operand.hbm [shape: f32[2,8,32], index: 0, kind: input, shape index: {}]   ;;  %s2318_s1 = inlined_call_operand.vmem [shape: f32[32,96], index: 1, kind: input, shape index: {}]   ;;  %s2319_s2 = inlined_call_operand.vmem [shape: f32[32,32], index: 2, kind: input, shape index: {}]   ;;  %s2320_s3 = inlined_call_operand.vmem [shape: f32[32,64], index: 3, kind: input, shape index: {}]   ;;  %s2321_s4 = inlined_call_operand.vmem [shape: f32[1,64], index: 4, kind: input, shape index: {}]   ;;  %s2322_s5 = inlined_call_operand.vmem [shape: f32[64,32], index: 5, kind: input, shape index: {}]   ;;  %s2323_s6 = inlined_call_operand.vmem [shape: f32[1,32], index: 6, kind: input, shape index: {}]   ;;  %s2324_s7 = inlined_call_operand.vmem [shape: f32[1,32], index: 7, kind: input, shape index: {}]   ;;  %s2325_s8 = inlined_call_operand.vmem [shape: f32[1,32], index: 8, kind: input, shape index: {}]   ;;  %s2326_s9 = inlined_call_operand.vmem [shape: f32[1,32], index: 9, kind: input, shape index: {}]   ;;  %s2327_s10 = inlined_call_operand.vmem [shape: f32[1,32], index: 10, kind: input, shape index: {}]   ;;  %s2328_s11 = inlined_call_operand.hbm [shape: f32[2,8,32], index: 11, kind: output, shape index: {}]  }
   0x1   :  { %18 = vsyncpa [#allocation4 + $0x1], 0 }
   0x2   :  { %19 = vsyncpa [#allocation5], 0 }
   0x3   :  { %21 = vsyncpa [#allocation5 + $0x1], 0  ;;  %s1998_s17 = smov 0   ;;  %s2000_s18 = smov 0  }
   0x4   :  { %s2002_s19 = smov 0   ;;  %s2004_s20 = smov 0  }
   0x5 LB: > { %2335 = sst [smem:[#allocation9_spill]] %s1914_s19  ;;  %s2019_s21 = sadd.s32 4294967295, %s1918_s20   ;;  %s1918_s20 = sphi %s2004_s20, %s2351_s20   ;;  %s1914_s19 = sphi %s2002_s19, %s2353_s19   ;;  %s1910_s18 = sphi %s2000_s18, %s2355_s18   ;;  %s1906_s17 = sphi %s1998_s17, %s2354_s17  }
   0x6   : > { %s1574_s22 = sadd.s32 4294967294, %s1918_s20   ;;  %s2023_s23 = sadd.s32 1, %s1918_s20  }
   0x7   : > { %2336 = sst [smem:[#allocation10_spill]] %s2023_s23  ;;  %s34_s24 = sadd.s32 1, %s1914_s19 }
   0x8   : > { %s31_s25 = ssub.s32 %s1918_s20, %s2023_s23  ;;  %p41_p0 = scmp.ne.s32.totalorder %s1914_s19, %s1910_s18 }
   0x9   : > { %p32_p1 = scmp.eq.s32.totalorder %s31_s25, 0  ;;  %p42_p2 = scmp.eq.s32.totalorder %s1918_s20, 0 }
   0xa   : > { %p47_p3 = scmp.ne.s32.totalorder %s1910_s18, %s1906_s17  ;;  %p48_p4 = scmp.eq.s32.totalorder %s2019_s21, 0 }
   0xb   : > { %s2035_s26 = scalar_select %p32_p1, %s1914_s19, %s34_s24  }
   0xc   : > { %p2037_p5 = por %p42_p2, %p41_p0  ;;  %p2041_p6 = por %p48_p4, %p47_p3 }
   0xd   : > { %2337 = sst [smem:[#allocation11_spill]] %s2035_s26  ;;  %p281_p7 = scmp.eq.s32.totalorder %s2019_s21, 1 }
   0xe   : > { %s2339_s28 = scalar_select %p2041_p6, 1, 0 }
   0xf   : > { %p287_p8 = scmp.eq.s32.totalorder %s1574_s22, 1  ;;  %p1752_p10 = scmp.lt.s32.totalorder %s1918_s20, 2 }
  0x10   : > { %p2048_p11 = por %p281_p7, %p41_p0  ;;  %s337_s12 = sand.u32 1, %s1914_s19  }
  0x11   : > { %p2052_p12 = por %p287_p8, %p47_p3  ;;  %s1578_s13 = sshll.u32 %s1918_s20, 7 }
  0x12   : > { %s2340_s29 = scalar_select %p2048_p11, 1, 0 }
  0x13   : > { %s2341_s30 = scalar_select %p2052_p12, 1, 0 }
  0x14   : > { %s1577_s14 = sshll.u32 %s337_s12, 3  ;;  %s2061_s24 = scalar_lea.hbm %s2317_s0, %s1578_s13 }
  0x15   : > { %2342 = sst [smem:[#allocation12_spill]] %s2341_s30  ;;  %s341_s22 = scalar_lea.vmem [#allocation3], %s1577_s14 }
  0x16   : > { %s348_s25 = sshll.u32 %s341_s22, 4  ;;  %p2065_p13 = pnand %p1752_p10, %p2037_p5  ;;  %s2069_s25 = int_to_ptr.vmem [resolvable:$true] %s348_s25 }
  0x17   : > { %s338_s19 = scalar_lea.sflag [#allocation4], %s337_s12  ;;  %s1826_s23 = scalar_lea.hbm %s2061_s24, 128 }
  0x18   : > { %p1827_p2 = scmp.ne.s32.totalorder %s2061_s24, %s1826_s23  ;;  %p1828_p3 = pneg %p2065_p13 }
  0x19   : > { %s1831_s27 = scalar_lea.hbm %s2317_s0, 256  ;;  %p1832_p5 = scmp.lt.s32.totalorder %s2061_s24, %s2317_s0 }
  0x1a   : > { %p1829_p4 = pnand %p1828_p3, %p1827_p2  ;;  %p1833_p8 = scmp.lt.s32.totalorder %s1831_s27, %s1826_s23 }
  0x1c   : > { %p1830_p7 = pneg %p1829_p4  ;;  %p1834_p10 = por %p1833_p8, %p1832_p5 }
  0x1e   : > { %p1835_p9 = pnand %p1834_p10, %p1830_p7 }
  0x20   : > { %1838 = shalt.err (!%p1835_p9)
}
  0x21   : > { %s1839_s12 = scalar_lea.vmem %s2069_s25, 128  ;;  %s1920_s22 = smov [#allocation3]  }
  0x22   : > { %p1840_p0 = scmp.ne.s32.totalorder %s2069_s25, %s1839_s12  ;;  %s1844_s30 = sshll.u32 %s1920_s22, 4  ;;  %s1845_s30 = int_to_ptr.vmem [resolvable:$false] %s1844_s30 }
  0x23   : > { %s1846_s13 = scalar_lea.vmem %s1845_s30, 256  ;;  %p1847_p4 = scmp.lt.s32.totalorder %s2069_s25, %s1845_s30 }
  0x24   : > { %p1842_p1 = pnand %p1840_p0, %p1828_p3  ;;  %p1848_p12 = scmp.lt.s32.totalorder %s1846_s13, %s1839_s12 }
  0x26   : > { %p1843_p2 = pneg %p1842_p1  ;;  %p1849_p11 = por %p1848_p12, %p1847_p4 }
  0x28   : > { %p1850_p6 = pnand %p1849_p11, %p1843_p2 }
  0x2a   : > { %1853 = shalt.err (!%p1850_p6)
}
  0x2b   : > { %1747 = dma.hbm_to_vmem [thread:$0]  (!%p2065_p13), %s2061_s24, 128, %s2069_s25, %s338_s19  }
  0x2c   : > { %p2344_p9 = scmp.lt.s32.totalorder %s1918_s20, 3  ;;  %p2345_p7 = scmp.ge.s32.totalorder %s1918_s20, 1 }
  0x2e   : > { %p354_p0 = pnand %p2345_p7, %p2344_p9 }
  0x2f   : > { %s2096_s23 = sand.u32 (!%p354_p0), 1, %s1910_s18   ;;  %p2346_p6 = scmp.ne.s32.totalorder (!%p354_p0), %s2339_s28, 0 }
  0x30   : > { %357 = sbr.rel (%p354_p0) target bundleno = 2507 (0x9cb), region = 64  ;;  %s1580_s30 = sshll.u32 (!%p354_p0), %s2096_s23, 3 }
  0x31   : > { %s360_s14 = scalar_lea.sflag (!%p354_p0), [#allocation4], %s2096_s23  ;;  %s363_s26 = scalar_lea.vmem (!%p354_p0), [#allocation3], %s1580_s30 }
  0x35   : > { %1897 = dma.done.wait (%p2346_p6), %s360_s14, 128  }
  0x36   : > { %1899 = vsyncadd (%p2346_p6), %s360_s14, 4294967168  ;;  %v1921_v0 = vmov 0.0   ;;  %vm1922_vm0 = vmmov 0   ;;  %v406_v1 = vld [vmem:[%s2318_s1 + $0x18] sm:$0xff]  ;;  %v405_v2 = vld [vmem:[%s2318_s1 + $0x10] sm:$0xff]  ;;  %vm407_vm1 = vcmask 261120  }
  0x37   : > { %1648 = vmatprep.subr.mxu1 %v1921_v0  ;;  %1656 = vmatprep.mubr.msk.f32.mxu1 %vm1922_vm0, %v1921_v0  ;;  %v404_v3 = vld [vmem:[%s2318_s1 + $0x8] sm:$0xff]  ;;  %v403_v4 = vld [vmem:[%s2318_s1] sm:$0xff]  ;;  %s1923_s22 = smov 96   ;;  %s1924_s13 = smov 120   ;;  %vm485_vm2 = vcmask 64512   ;;  %vm818_vm3 = vcmask 130112  }
  0x38   : > { %1669 = vmatprep.subr.mxu0 %v1921_v0  ;;  %1671 = vmatprep.mubr.msk.f32.mxu0 %vm1922_vm0, %v1921_v0  ;;  %v2126_v5 = vld [vmem:[%s363_s26] sm:$0xff]  ;;  %s1925_s14 = smov 88   ;;  %s1926_s26 = smov 80   ;;  %vm989_vm4 = vcmask 195712   ;;  %vm1160_vm5 = vcmask 261312   ;;  %vm1378_vm8 = vcmask 523264  }
  0x39   : > { %1649 = vmatpush3.msra.mxu1 %v406_v1  ;;  %s1927_s19 = smov 112   ;;  %s1928_s24 = smov 72  }
  0x3a   : > { %1650 = vmatprep.subr.mxu1 %v1921_v0  ;;  %s1929_s25 = smov 104   ;;  %s1930_s27 = smov 56  }
  0x3b   : > { %1651 = vmatpush3.msra.mxu1 %v405_v2  ;;  %s1931_s28 = smov 64   ;;  %s1932_s15 = smov 48  }
  0x3c   : > { %1652 = vmatprep.subr.mxu1 %v1921_v0  ;;  %s1933_s16 = smov 40   ;;  %s1934_s12 = smov 8  }
  0x3d   : > { %1653 = vmatpush3.msra.mxu1 %v404_v3  ;;  %p2347_p12 = scmp.ne.s32.totalorder %s2340_s29, 0 }
  0x3e   : > { %1654 = vmatprep.subr.mxu1 %v1921_v0 }
  0x3f   : > { %1655 = vmatpush3.msra.mxu1 %v403_v4 }
  0x40   : > { %1657 = vmatmul.mubr.msk.f32.vlgmr.msra.gmra.mxu1 %vm407_vm1, %v2126_v5  ;;  %1659 = vmatprep.subr.mxu1 %v1921_v0 }
  0x41   : > { %1661 = vmatprep.mubr.msk.f32.mxu1 %vm1922_vm0, %v1921_v0 }
 0x100   : > { %v2134_v6 = vpop.f32.mrf.mxu1 }
 0x101   : > { %483 = vrot.lane.b32.xlu0 %v2134_v6, %s1923_s22  ;;  %v481_v7 = vmul.f32 0.35355338, %v2134_v6 }
 0x102   : > { %v1658_v8 = vpop.f32.mrf.mxu1 }
 0x103   : > { %649 = vrot.lane.b32.xlu1 %v481_v7, %s1924_s13  ;;  %v1164_v8 = vld [vmem:[%s2319_s2 + $0x8] sm:$0xff] }
 0x105   : > { %651 = vrot.lane.b32.xlu0 %v2134_v6, %s1925_s14 }
 0x107   : > { %822 = vrot.lane.b32.xlu1 %v2134_v6, %s1926_s26 }
 0x109   : > { %820 = vrot.lane.b32.xlu0 %v481_v7, %s1927_s19  ;;  %s1491_s19 = scalar_lea.sflag [#allocation5], %s2096_s23 }
 0x10b   : > { %993 = vrot.lane.b32.xlu1 %v2134_v6, %s1928_s24 }
 0x10d   : > { %991 = vrot.lane.b32.xlu0 %v481_v7, %s1929_s25  ;;  %s1937_s25 = smov [#allocation6]  }
 0x173   : > { %v484_v9 = vpop.permute.xlu0 %483 }
 0x174   : > { %1660 = vmatpush3.xpose.msk.msra.mxu1 %vm485_vm2, %v484_v9  ;;  %v1163_v9 = vld [vmem:[%s2319_s2] sm:$0xff] }
 0x175   : > { %v650_v10 = vpop.permute.xlu1 %649  ;;  %1664 = vmatprep.subr.mxu1 %v1921_v0 }
 0x177   : > { %v652_v11 = vpop.permute.xlu0 %651  ;;  %1662 = vmatmul.mubr.msk.f32.vlgmr.msra.gmra.mxu1 %vm485_vm2, %v481_v7  ;;  %v1165_v7 = vld [vmem:[%s2319_s2 + $0x10] sm:$0xff] }
 0x178   : > { %1670 = vmatpush3.xpose.msk.msra.mxu0 %vm485_vm2, %v652_v11  ;;  %1666 = vmatprep.mubr.msk.f32.mxu1 %vm1922_vm0, %v1921_v0 }
 0x179   : > { %v823_v12 = vpop.permute.xlu1 %822  ;;  %1679 = vmatprep.subr.mxu0 %v1921_v0 }
 0x17b   : > { %1672 = vmatmul.mubr.msk.f32.vlgmr.msra.gmra.mxu0 %vm485_vm2, %v650_v10  ;;  %v821_v13 = vpop.permute.xlu0 %820 }
 0x17c   : > { %1680 = vmatpush3.xpose.msk.msra.mxu0 %vm485_vm2, %v823_v12  ;;  %1681 = vmatprep.mubr.msk.f32.mxu0 %vm1922_vm0, %v1921_v0 }
 0x17d   : > { %1689 = vmatprep.subr.mxu0 %v1921_v0  ;;  %v994_v14 = vpop.permute.xlu1 %993 }
 0x17f   : > { %1682 = vmatmul.mubr.msk.f32.vlgmr.msra.gmra.mxu0 %vm485_vm2, %v821_v13  ;;  %v992_v15 = vpop.permute.xlu0 %991 }
 0x180   : > { %1690 = vmatpush3.xpose.msk.msra.mxu0 %vm485_vm2, %v994_v14  ;;  %1691 = vmatprep.mubr.msk.f32.mxu0 %vm1922_vm0, %v1921_v0 }
 0x181   : > { %1699 = vmatprep.subr.mxu0 %v1921_v0 }
 0x183   : > { %1692 = vmatmul.mubr.msk.f32.vlgmr.msra.gmra.mxu0 %vm485_vm2, %v992_v15 }
 0x184   : > { %1707 = vmatprep.mubr.msk.f32.mxu0 %vm1922_vm0, %v1921_v0 }
 0x237   : > { %v557_v16 = vpop.f32.mrf.mxu1 }
 0x238   : > { %v561_v17 = vsel %vm485_vm2, %v557_v16, -inf }
 0x239   : > { %562 = vmax.xlane.f32.xlu1 %v561_v17  ;;  %v1663_v18 = vpop.f32.mrf.mxu1 }
 0x23b   : > { %v723_v19 = vpop.f32.mrf.mxu0 }
 0x23c   : > { %v727_v20 = vsel %vm485_vm2, %v723_v19, -inf }
 0x23d   : > { %728 = vmax.xlane.f32.xlu0 %v727_v20  ;;  %v1673_v21 = vpop.f32.mrf.mxu0 }
 0x23f   : > { %v894_v22 = vpop.f32.mrf.mxu0 }
 0x240   : > { %v898_v23 = vsel %vm485_vm2, %v894_v22, -inf }
 0x241   : > { %899 = vmax.xlane.f32.xlu0 %v898_v23  ;;  %v1683_v24 = vpop.f32.mrf.mxu0 }
 0x243   : > { %v1065_v25 = vpop.f32.mrf.mxu0 }
 0x244   : > { %v1069_v26 = vsel %vm485_vm2, %v1065_v25, -inf }
 0x245   : > { %v1693_v27 = vpop.f32.mrf.mxu0  ;;  %1070 = vmax.xlane.f32.xlu1 %v1069_v26 }
 0x246   : > { %v1281_v27 = vld [vmem:[%s2320_s3 + $0x18] sm:$0xff] }
 0x256   : > { %738 = vrot.lane.b32.xlu1 %v2134_v6, %s1930_s27 }
 0x2c2   : > { %v563_v28 = vpop.xlane.xlu1 %562 }
 0x2c3   : > { %v564_v29 = vsub.f32 %v557_v16, %v563_v28  ;;  %v1280_v28 = vld [vmem:[%s2320_s3 + $0x10] sm:$0xff] }
 0x2c5   : > { %v565_v30 = vmul.f32 1.442695, %v564_v29  ;;  %v1278_v29 = vld [vmem:[%s2320_s3] sm:$0xff] }
 0x2c6   : > { %v729_v31 = vpop.xlane.xlu0 %728 }
 0x2c7   : > { %1802 = vpow2.f32 %v565_v30  ;;  %v730_v32 = vsub.f32 %v723_v19, %v729_v31  ;;  %v1370_v30 = vld [vmem:[%s2322_s5 + $0x38] sm:$0xff]  ;;  %v1369_v31 = vld [vmem:[%s2322_s5 + $0x30] sm:$0xff] }
 0x2c9   : > { %v731_v33 = vmul.f32 1.442695, %v730_v32  ;;  %v1368_v32 = vld [vmem:[%s2322_s5 + $0x28] sm:$0xff] }
 0x2ca   : > { %v900_v43 = vpop.xlane.xlu0 %899 }
 0x2cb   : > { %1804 = vpow2.f32 %v731_v33  ;;  %v901_v44 = vsub.f32 %v894_v22, %v900_v43  ;;  %v1367_v33 = vld [vmem:[%s2322_s5 + $0x20] sm:$0xff] }
 0x2cd   : > { %v902_v45 = vmul.f32 1.442695, %v901_v44  ;;  %v1596_v44 = vld [vmem:[%s2324_s7] ss:$0 sm:$0xff] }
 0x2ce   : > { %v1071_v34 = vpop.xlane.xlu1 %1070 }
 0x2cf   : > { %v1072_v35 = vsub.f32 %v1065_v25, %v1071_v34  ;;  %v1366_v34 = vld [vmem:[%s2322_s5 + $0x18] sm:$0xff] }
 0x2d1   : > { %v1073_v36 = vmul.f32 1.442695, %v1072_v35 }
 0x2d2   : > { %v739_v48 = vpop.permute.xlu1 %738 }
 0x2d3   : > { %1806 = vpow2.f32 %v1073_v36 }
 0x2d4   : > { %v1803_v37 = vpop.eup %1802  ;;  %1808 = vpow2.f32 %v902_v45 }
 0x2d5   : > { %v567_v38 = vsel %vm485_vm2, %v1803_v37, 0.0 }
 0x2d6   : > { %568 = vadd.xlane.f32.xlu0 %v567_v38 }
 0x2d8   : > { %v1805_v39 = vpop.eup %1804 }
 0x2d9   : > { %v733_v40 = vsel %vm485_vm2, %v1805_v39, 0.0 }
 0x2da   : > { %734 = vadd.xlane.f32.xlu1 %v733_v40 }
 0x2e0   : > { %v1807_v41 = vpop.eup %1806 }
 0x2e1   : > { %v1075_v42 = vsel %vm485_vm2, %v1807_v41, 0.0  ;;  %v1809_v46 = vpop.eup %1808 }
 0x2e2   : > { %1076 = vadd.xlane.f32.xlu1 %v1075_v42  ;;  %v904_v47 = vsel %vm485_vm2, %v1809_v46, 0.0 }
 0x2ec   : > { %572 = vrot.lane.b32.xlu0 %v2134_v6, %s1931_s28  ;;  %s1935_s28 = smov 16  }
 0x2f3   : > { %909 = vrot.lane.b32.xlu1 %v2134_v6, %s1932_s15  ;;  %s1936_s15 = smov 24  }
 0x30b   : > { %905 = vadd.xlane.f32.xlu0 %v904_v47 }
 0x321   : > { %1080 = vrot.lane.b32.xlu0 %v2134_v6, %s1933_s16  ;;  %v1166_v6 = vld [vmem:[%s2319_s2 + $0x18] sm:$0xff]  ;;  %s1605_s16 = sshll.u32 %s2019_s21, 7  ;;  %s1858_s21 = sshll.u32 %s1937_s25, 4  ;;  %s1859_s21 = int_to_ptr.vmem [resolvable:$false] %s1858_s21 }
 0x322   : > { %1700 = vmatpush3.msra.mxu0 %v1166_v6  ;;  %s1502_s26 = scalar_lea.hbm %s2328_s11, %s1605_s16 }
 0x323   : > { %1701 = vmatprep.subr.mxu0 %v1921_v0 }
 0x324   : > { %1702 = vmatpush3.msra.mxu0 %v1165_v7 }
 0x325   : > { %1703 = vmatprep.subr.mxu0 %v1921_v0 }
 0x326   : > { %1704 = vmatpush3.msra.mxu0 %v1164_v8 }
 0x327   : > { %1705 = vmatprep.subr.mxu0 %v1921_v0 }
 0x328   : > { %1706 = vmatpush3.msra.mxu0 %v1163_v9 }
 0x329   : > { %1721 = vmatprep.subr.mxu0 %v1921_v0 }
 0x35f   : > { %v569_v49 = vpop.xlane.xlu0 %568 }
 0x360   : > { %1810 = vrcp.f32 %v569_v49  ;;  %v1365_v49 = vld [vmem:[%s2322_s5 + $0x10] sm:$0xff] }
 0x363   : > { %v573_v50 = vpop.permute.xlu0 %572  ;;  %v735_v51 = vpop.xlane.xlu1 %734 }
 0x364   : > { %1812 = vrcp.f32 %v735_v51  ;;  %1665 = vmatpush3.msra.mxu1 %v573_v50  ;;  %v1364_v50 = vld [vmem:[%s2322_s5 + $0x8] sm:$0xff]  ;;  %v1363_v51 = vld [vmem:[%s2322_s5] sm:$0xff] }
 0x365   : > { %1674 = vmatprep.subr.mxu1 %v1921_v0 }
 0x36b   : > { %v1077_v53 = vpop.xlane.xlu1 %1076 }
 0x36d   : > { %v1811_v52 = vpop.eup %1810 }
 0x36e   : > { %v571_v54 = vmul.f32 %v1811_v52, %v1803_v37  ;;  %v1598_v52 = vld [vmem:[%s2321_s4] ss:$0 sm:$0xff] }
 0x36f   : > { %v910_v57 = vpop.permute.xlu1 %909 }
 0x370   : > { %1667 = vmatmul.mubr.msk.f32.vlgmr.msra.gmra.mxu1 %vm485_vm2, %v571_v54 }
 0x371   : > { %v1813_v55 = vpop.eup %1812  ;;  %1675 = vmatpush3.msra.mxu1 %v739_v48  ;;  %1676 = vmatprep.mubr.msk.f32.mxu1 %vm1922_vm0, %v1921_v0 }
 0x372   : > { %1684 = vmatprep.subr.mxu1 %v1921_v0  ;;  %v737_v56 = vmul.f32 %v1813_v55, %v1805_v39 }
 0x374   : > { %1677 = vmatmul.mubr.msk.f32.vlgmr.msra.gmra.mxu1 %vm485_vm2, %v737_v56 }
 0x375   : > { %1685 = vmatpush3.msra.mxu1 %v910_v57  ;;  %1686 = vmatprep.mubr.msk.f32.mxu1 %vm1922_vm0, %v1921_v0  ;;  %v1600_v57 = vld [vmem:[%s2323_s6] ss:$0 sm:$0xff] }
 0x376   : > { %1694 = vmatprep.subr.mxu1 %v1921_v0 }
 0x394   : > { %v906_v58 = vpop.xlane.xlu0 %905 }
 0x395   : > { %1814 = vrcp.f32 %v906_v58 }
 0x396   : > { %1816 = vrcp.f32 %v1077_v53 }
 0x398   : > { %v1081_v62 = vpop.permute.xlu0 %1080 }
 0x3a2   : > { %v1815_v59 = vpop.eup %1814 }
 0x3a3   : > { %v908_v60 = vmul.f32 %v1815_v59, %v1809_v46  ;;  %v1817_v61 = vpop.eup %1816  ;;  %v1597_v46 = vld [vmem:[%s2325_s8] ss:$0 sm:$0xff] }
 0x3a4   : > { %v1079_v63 = vmul.f32 %v1817_v61, %v1807_v41 }
 0x3a5   : > { %1687 = vmatmul.mubr.msk.f32.vlgmr.msra.gmra.mxu1 %vm485_vm2, %v908_v60 }
 0x3a6   : > { %1695 = vmatpush3.msra.mxu1 %v1081_v62  ;;  %1696 = vmatprep.mubr.msk.f32.mxu1 %vm1922_vm0, %v1921_v0 }
 0x3a7   : > { %1710 = vmatprep.subr.mxu1 %v1921_v0 }
 0x3a9   : > { %1697 = vmatmul.mubr.msk.f32.vlgmr.msra.gmra.mxu1 %vm485_vm2, %v1079_v63 }
 0x3aa   : > { %1718 = vmatprep.mubr.msk.f32.mxu1 %vm1922_vm0, %v1921_v0  ;;  %1711 = vmatpush3.msra.mxu1 %v1281_v27 }
 0x3ab   : > { %1712 = vmatprep.subr.mxu1 %v1921_v0 }
 0x3ac   : > { %1713 = vmatpush3.msra.mxu1 %v1280_v28 }
 0x3ad   : > { %1714 = vmatprep.subr.mxu1 %v1921_v0 }
 0x430   : > { %v644_v1 = vpop.f32.mrf.mxu1 }
 0x431   : > { %648 = vst.msk [vmem:[#allocation2] sm:$0xff] %vm485_vm2, %v644_v1 }
 0x432   : > { %v1668_v2 = vpop.f32.mrf.mxu1 }
 0x434   : > { %v810_v3 = vpop.f32.mrf.mxu1 }
 0x435   : > { %815 = vrot.lane.b32.xlu1 %v810_v3, %s1934_s12  ;;  %s401_s12 = scalar_lea.vmem [#allocation6], %s1580_s30  ;;  %s1860_s30 = scalar_lea.vmem %s1859_s21, 256 }
 0x436   : > { %v1678_v4 = vpop.f32.mrf.mxu1  ;;  %s1504_s22 = sshll.u32 %s401_s12, 4  ;;  %s1505_s22 = int_to_ptr.vmem [resolvable:$true] %s1504_s22 }
 0x437   : > { %s1854_s24 = scalar_lea.vmem %s1505_s22, 128  ;;  %p1861_p3 = scmp.lt.s32.totalorder %s1505_s22, %s1859_s21 }
 0x438   : > { %p1855_p11 = scmp.ne.s32.totalorder %s1505_s22, %s1854_s24  ;;  %p1862_p5 = scmp.lt.s32.totalorder %s1860_s30, %s1854_s24 }
 0x43a   : > { %p1856_p13 = pnand %p1855_p11, %p2347_p12  ;;  %p1863_p8 = por %p1862_p5, %p1861_p3 }
 0x43c   : > { %p1857_p1 = pneg %p1856_p13 }
 0x43e   : > { %p1864_p10 = pnand %p1863_p8, %p1857_p1 }
 0x465   : > { %v981_v10 = vpop.f32.mrf.mxu1 }
 0x466   : > { %986 = vrot.lane.b32.xlu0 %v981_v10, %s1935_s28 }
 0x467   : > { %v1688_v11 = vpop.f32.mrf.mxu1 }
 0x469   : > { %v1152_v12 = vpop.f32.mrf.mxu1 }
 0x46a   : > { %1157 = vrot.lane.b32.xlu1 %v1152_v12, %s1936_s15 }
 0x46b   : > { %v1698_v13 = vpop.f32.mrf.mxu1 }
 0x4a7   : > { %v816_v14 = vpop.permute.xlu1 %815 }
 0x4a8   : > { %819 = vst.msk [vmem:[#allocation2] sm:$0xff] %vm818_vm3, %v816_v14  ;;  %v1602_v14 = vld [vmem:[%s2326_s9] ss:$0 sm:$0xff] }
 0x4d8   : > { %v987_v15 = vpop.permute.xlu0 %986 }
 0x4d9   : > { %990 = vst.msk [vmem:[#allocation2] sm:$0xff] %vm989_vm4, %v987_v15 }
 0x4dc   : > { %v1158_v16 = vpop.permute.xlu1 %1157 }
 0x4dd   : > { %1161 = vst.msk [vmem:[#allocation2] sm:$0xff] %vm1160_vm5, %v1158_v16  ;;  %v1603_v16 = vld [vmem:[%s2327_s10] ss:$0 sm:$0xff] }
 0x4e4   : > { %v1162_v17 = vld [vmem:[#allocation2] sm:$0xff] }
 0x4e5   : > { %1708 = vmatmul.mubr.msk.f32.vlgmr.msra.gmra.mxu0 %vm407_vm1, %v1162_v17 }
 0x4e6   : > { %1737 = vmatprep.mubr.msk.f32.mxu0 %vm1922_vm0, %v1921_v0  ;;  %1722 = vmatpush3.msra.mxu0 %v1370_v30 }
 0x4e7   : > { %1723 = vmatprep.subr.mxu0 %v1921_v0 }
 0x4e8   : > { %1724 = vmatpush3.msra.mxu0 %v1369_v31 }
 0x4e9   : > { %1725 = vmatprep.subr.mxu0 %v1921_v0 }
 0x4ea   : > { %1726 = vmatpush3.msra.mxu0 %v1368_v32 }
 0x4eb   : > { %1727 = vmatprep.subr.mxu0 %v1921_v0 }
 0x4ec   : > { %1728 = vmatpush3.msra.mxu0 %v1367_v33 }
 0x4ed   : > { %1729 = vmatprep.subr.mxu0 %v1921_v0 }
 0x4ee   : > { %1730 = vmatpush3.msra.mxu0 %v1366_v34 }
 0x4ef   : > { %1731 = vmatprep.subr.mxu0 %v1921_v0 }
 0x4f0   : > { %1732 = vmatpush3.msra.mxu0 %v1365_v49 }
 0x4f1   : > { %1733 = vmatprep.subr.mxu0 %v1921_v0 }
 0x4f2   : > { %1734 = vmatpush3.msra.mxu0 %v1364_v50 }
 0x4f3   : > { %1735 = vmatprep.subr.mxu0 %v1921_v0 }
 0x4f4   : > { %1736 = vmatpush3.msra.mxu0 %v1363_v51 }
 0x5a5   : > { %v1236_v18 = vpop.f32.mrf.mxu0 }
 0x5a6   : > { %v1240_v19 = vadd.f32 %v1236_v18, %v2126_v5  ;;  %v1279_v5 = vld [vmem:[%s2320_s3 + $0x8] sm:$0xff] }
 0x5a7   : > { %v1709_v20 = vpop.f32.mrf.mxu0  ;;  %1715 = vmatpush3.msra.mxu1 %v1279_v5 }
 0x5a8   : > { %v1243_v21 = vsel %vm407_vm1, %v1240_v19, 0.0  ;;  %1716 = vmatprep.subr.mxu1 %v1921_v0 }
 0x5a9   : > { %1244 = vadd.xlane.f32.xlu0 %v1243_v21  ;;  %1717 = vmatpush3.msra.mxu1 %v1278_v29 }
 0x632   : > { %v1245_v22 = vpop.xlane.xlu0 %1244 }
 0x633   : > { %v1247_v23 = vmul.f32 0.03125, %v1245_v22 }
 0x635   : > { %v1248_v24 = vsub.f32 %v1240_v19, %v1247_v23 }
 0x637   : > { %v1249_v25 = vmul.f32 %v1248_v24, %v1248_v24 }
 0x639   : > { %v1250_v26 = vsel %vm407_vm1, %v1249_v25, 0.0 }
 0x63a   : > { %1251 = vadd.xlane.f32.xlu1 %v1250_v26 }
 0x6c3   : > { %v1252_v35 = vpop.xlane.xlu1 %1251 }
 0x6c4   : > { %v1253_v36 = vmul.f32 0.032258064, %v1252_v35 }
 0x6c6   : > { %1818 = vrsqrt.f32 %v1253_v36  ;;  %vm1256_vm6 = vcmp.eq.f32.partialorder %v1253_v36, inf  ;;  %v1259_v39 = vand.u32 2147483648, %v1253_v36  ;;  %vm1258_vm7 = vcmp.eq.f32.partialorder %v1253_v36, 0.0 }
 0x6d3   : > { %v1819_v37 = vpop.eup %1818 }
 0x6d4   : > { %v1255_v38 = vmul.f32 %v1819_v37, %v1253_v36 }
 0x6d6   : > { %v1257_v40 = vsel %vm1256_vm6, %v1253_v36, %v1255_v38 }
 0x6d7   : > { %v1260_v41 = vsel %vm1258_vm7, %v1259_v39, %v1257_v40 }
 0x6d8   : > { %v1261_v42 = vadd.f32 1e-06, %v1260_v41 }
 0x6da   : > { %1820 = vrcp.f32 %v1261_v42 }
 0x6e7   : > { %v1821_v43 = vpop.eup %1820 }
 0x6e8   : > { %v1263_v45 = vmul.f32 %v1821_v43, %v1248_v24 }
 0x6ea   : > { %v1270_v47 = vmul.f32 %v1596_v44, %v1263_v45 }
 0x6ec   : > { %v1277_v48 = vadd.f32 %v1597_v46, %v1270_v47 }
 0x6ee   : > { %1719 = vmatmul.mubr.msk.f32.vlgmr.msra.gmra.mxu1 %vm407_vm1, %v1277_v48 }
 0x7ae   : > { %v1358_v53 = vpop.f32.mrf.mxu1 }
 0x7af   : > { %v1359_v54 = vadd.f32 %v1598_v52, %v1358_v53 }
 0x7b0   : > { %v1720_v55 = vpop.f32.mrf.mxu1 }
 0x7b1   : > { %v1362_v56 = vmax.f32 %v1359_v54, 0.0 }
 0x7b3   : > { %1738 = vmatmul.mubr.msk.f32.vlgmr.msra.gmra.mxu0 %vm1378_vm8, %v1362_v56 }
 0x873   : > { %v1448_v58 = vpop.f32.mrf.mxu0 }
 0x874   : > { %v1449_v59 = vadd.f32 %v1600_v57, %v1448_v58 }
 0x875   : > { %v1739_v60 = vpop.f32.mrf.mxu0 }
 0x876   : > { %v1452_v61 = vadd.f32 %v1449_v59, %v1277_v48 }
 0x878   : > { %v1455_v0 = vsel %vm407_vm1, %v1452_v61, 0.0 }
 0x879   : > { %1456 = vadd.xlane.f32.xlu0 %v1455_v0 }
 0x902   : > { %v1457_v62 = vpop.xlane.xlu0 %1456 }
 0x903   : > { %v1458_v63 = vmul.f32 0.03125, %v1457_v62 }
 0x905   : > { %v1459_v1 = vsub.f32 %v1452_v61, %v1458_v63 }
 0x907   : > { %v1460_v2 = vmul.f32 %v1459_v1, %v1459_v1 }
 0x909   : > { %v1461_v3 = vsel %vm407_vm1, %v1460_v2, 0.0 }
 0x90a   : > { %1462 = vadd.xlane.f32.xlu0 %v1461_v3 }
 0x993   : > { %v1463_v4 = vpop.xlane.xlu0 %1462 }
 0x994   : > { %v1464_v6 = vmul.f32 0.032258064, %v1463_v4 }
 0x996   : > { %1822 = vrsqrt.f32 %v1464_v6  ;;  %vm1467_vm9 = vcmp.eq.f32.partialorder %v1464_v6, inf  ;;  %v1470_v9 = vand.u32 2147483648, %v1464_v6  ;;  %vm1469_vm10 = vcmp.eq.f32.partialorder %v1464_v6, 0.0 }
 0x9a3   : > { %v1823_v7 = vpop.eup %1822 }
 0x9a4   : > { %v1466_v8 = vmul.f32 %v1823_v7, %v1464_v6 }
 0x9a6   : > { %v1468_v10 = vsel %vm1467_vm9, %v1464_v6, %v1466_v8 }
 0x9a7   : > { %v1471_v11 = vsel %vm1469_vm10, %v1470_v9, %v1468_v10 }
 0x9a8   : > { %v1472_v12 = vadd.f32 1e-06, %v1471_v11 }
 0x9aa   : > { %1824 = vrcp.f32 %v1472_v12 }
 0x9b7   : > { %v1825_v13 = vpop.eup %1824 }
 0x9b8   : > { %v1474_v15 = vmul.f32 %v1825_v13, %v1459_v1 }
 0x9ba   : > { %v1481_v17 = vmul.f32 %v1602_v14, %v1474_v15 }
 0x9bc   : > { %v1488_v18 = vadd.f32 %v1603_v16, %v1481_v17 }
 0x9be   : > { %1489 = vst.msk [vmem:[%s401_s12] sm:$0xff] %vm407_vm1, %v1488_v18 }
 0x9bf   : > { %1867 = shalt.err (!%p1864_p10)
}
 0x9c0   : > { %s1868_s27 = scalar_lea.hbm %s1502_s26, 128  ;;  %s1872_s15 = scalar_lea.hbm %s2328_s11, 256 }
 0x9c1   : > { %p1869_p2 = scmp.ne.s32.totalorder %s1502_s26, %s1868_s27  ;;  %p1873_p7 = scmp.lt.s32.totalorder %s1502_s26, %s2328_s11 }
 0x9c2   : > { %p1874_p0 = scmp.lt.s32.totalorder %s1872_s15, %s1868_s27 }
 0x9c3   : > { %p1870_p4 = pnand %p1869_p2, %p2347_p12 }
 0x9c4   : > { %p1875_p6 = por %p1874_p0, %p1873_p7 }
 0x9c5   : > { %p1871_p9 = pneg %p1870_p4 }
 0x9c7   : > { %p1876_p11 = pnand %p1875_p6, %p1871_p9 }
 0x9c9   : > { %1879 = shalt.err (!%p1876_p11)
}
 0x9ca   : > { %1742 = dma.vmem_to_hbm [thread:$0]  (%p2347_p12), %s1505_s22, 128, %s1502_s26, %s1491_s19  }
 0x9cb PF: > { %s2348_s13 = sld [smem:[#allocation12_spill]]  ;;  %s1516_s14 = sand.u32 1, %s1906_s17  }
 0x9cc   : > { %p2350_p1 = scmp.ge.s32.totalorder %s1918_s20, 2  ;;  %s1517_s24 = scalar_lea.sflag [#allocation5], %s1516_s14 }
 0x9d1   : > { %p2349_p13 = scmp.ne.s32.totalorder %s2348_s13, 0 }
 0x9d3   : > { %p1749_p3 = pnand %p2350_p1, %p2349_p13 }
 0x9d5   : > { %p1750_p5 = pneg %p1749_p3 }
 0x9d7   : > { %1901 = dma.done.wait (%p1750_p5), %s1517_s24, 128  }
 0x9d8   : > { %1903 = vsyncadd (%p1750_p5), %s1517_s24, 4294967168  ;;  %s2351_s20 = sld [smem:[#allocation10_spill]]  ;;  %s2354_s17 = smov %s1910_s18 }
 0x9d9   : > { %s2352_s25 = sld [smem:[#allocation9_spill]] }
 0x9da   : > { %s2353_s19 = sld [smem:[#allocation11_spill]] }
 0x9de   : > { %p24_p8 = scmp.ge.s32.totalorder %s2351_s20, 4  }
 0x9df   : > { %s2355_s18 = smov %s2352_s25 }
 0x9e0   :  { %26 = sbr.rel (!%p24_p8) target bundleno = 5 (0x5), region = 109 }
 0x9e5   :  { %1522 = vsyncpa [#allocation4], 1 }
 0x9e6   :  { %1524 = vsyncpa [#allocation4 + $0x1], 1 }
 0x9e7   :  { %1525 = vsyncpa [#allocation5], 1 }
 0x9e8   :  { %1527 = vsyncpa [#allocation5 + $0x1], 1 }

</bundles_post_ra>
